<compile_context>
chip_gen: v6e
topology: v6e:2x2x1
jax: 0.10.0
libtpu: 0.0.40
codegen_flags: <defaults>
</compile_context>

<pallas_src>
import jax
import jax.numpy as jnp
from jax.experimental import pallas as pl
from jax.experimental.pallas import tpu as pltpu


def _cond_kernel(cond_ref, out_ref):
    # cond_ref / out_ref: (1,) int32 refs in SMEM.  Pure scalar-unit work:
    # normalize any nonzero value to 1 (truthiness), zero stays 0.
    out_ref[0] = (cond_ref[0] != 0).astype(jnp.int32)


# Build the pallas_call once and jit it so repeated forward() calls hit the
# compilation cache instead of re-tracing the kernel each time.
_cond_pallas_call = pl.pallas_call(
    _cond_kernel,
    out_shape=jax.ShapeDtypeStruct((1,), jnp.int32),
    in_specs=[pl.BlockSpec(memory_space=pltpu.MemorySpace.SMEM)],
    out_specs=pl.BlockSpec(memory_space=pltpu.MemorySpace.SMEM),
)


@jax.jit
def _evaluate_cond_jit(cond_i32):
    return _cond_pallas_call(cond_i32)[0]


def _evaluate_cond_on_tpu(cond) -> jnp.ndarray:
    """Evaluate a traced scalar condition with a minimal SMEM-only Pallas kernel.

    Returns a scalar int32 in {0, 1}.
    """
    c = jnp.asarray(cond).astype(jnp.int32).reshape(1)
    return _evaluate_cond_jit(c)


class ConditionalExceptionWrapper:
    """JAX/Pallas equivalent of the PyTorch ConditionalExceptionWrapper.

    __init__ takes the Exception class being wrapped; forward takes the
    condition (Python bool or scalar JAX array) and the exception message.
    """

    _is_impure = True

    def __init__(self, exc):
        self.exc = exc

    def forward(self, cond, msg):
        # Constant-fold Python-level bools/ints: no kernel needed.
        if isinstance(cond, (bool, int)) and not isinstance(cond, jnp.ndarray):
            cond_true = bool(cond)
        else:
            # Traced / device scalar: normalize via the SMEM Pallas kernel and
            # materialize a concrete value (the raise below is host control
            # flow, so this path must not be wrapped in jit by the caller).
            result = jax.block_until_ready(_evaluate_cond_on_tpu(cond))
            cond_true = bool(result)

        # TODO(synk): the `raise` itself has no device-side equivalent; it is
        # performed here on the host once the condition is concrete.
        if cond_true:
            raise self.exc if msg is None else self.exc(msg)

    __call__ = forward


if __name__ == "__main__":
    key = jax.random.PRNGKey(0)
    k1, k2 = jax.random.split(key)

    # Small deterministic inputs consistent with the kinds of predicates this
    # wrapper guards (scalar conditions derived from tensors).
    x = jax.random.normal(k1, (2, 4, 16, 16), dtype=jnp.float32)
    y = jax.random.normal(k2, (8, 32), dtype=jnp.float32)

    wrapper = ConditionalExceptionWrapper(AssertionError)

    # Case 1: condition is False -> forward must NOT raise.
    cond_false = jnp.sum(x) > 1e9  # False
    wrapper.forward(cond_false, "sum(x) unexpectedly huge")

    # Case 2: condition is True -> forward must raise AssertionError with msg.
    cond_true = jnp.min(jnp.abs(x)) >= 0.0  # True
    raised = False
    try:
        wrapper.forward(cond_true, "abs(x) is non-negative (expected raise)")
    except AssertionError as e:
        raised = True
        assert "expected raise" in str(e)
    assert raised, "expected AssertionError was not raised"

    # Case 3: Python-bool condition is constant-folded (no kernel launch).
    raised_py = False
    try:
        wrapper.forward(y.shape[0] == 8, "python-bool cond (expected raise)")
    except AssertionError:
        raised_py = True
    assert raised_py

    # Case 4: msg is None -> raise bare exception class.
    raised_none = False
    try:
        wrapper.forward(cond_true, None)
    except AssertionError:
        raised_none = True
    assert raised_none

    # Sanity-check the kernel output directly (run twice: hits jit cache).
    r0 = jax.block_until_ready(_evaluate_cond_on_tpu(cond_false))
    r1 = jax.block_until_ready(_evaluate_cond_on_tpu(cond_true))
    assert int(r0) == 0 and int(r1) == 1, (int(r0), int(r1))

    print("KERNEL_OK")
</pallas_src>

<mosaic_0001>
module attributes {stable_mosaic.version = 11 : i64} {
  func.func @_cond_kernel(%arg0: memref<1xi32, #tpu.memory_space<smem>>, %arg1: memref<1xi32, #tpu.memory_space<smem>>) attributes {dimension_semantics = [], scalar_prefetch = 0 : i64, scratch_operands = 0 : i64, tpu.core_type = #tpu.core_type<tc>} {
    %c0 = arith.constant 0 : index
    %0 = memref.load %arg0[%c0] : memref<1xi32, #tpu.memory_space<smem>>
    %c0_i32 = arith.constant 0 : i32
    %1 = arith.cmpi ne, %0, %c0_i32 : i32
    %2 = arith.extui %1 : i1 to i32
    %c0_0 = arith.constant 0 : index
    %3 = memref.load %arg1[%c0_0] : memref<1xi32, #tpu.memory_space<smem>>
    memref.store %2, %arg1[%c0_0] : memref<1xi32, #tpu.memory_space<smem>>
    return
  }
}

</mosaic_0001>

<bundles_post_ra>
// kernel: _evaluate_cond_jit.1
= control target key start
LH: loop header
LB: loop body
LE: loop exit
PB: predicated region body
PF: predicated region fallthrough
CT: control target
= control target key end

     0   :  { %7 = vsyncpa [#allocation4], 0  ;;  %s39_s9 = smov [#allocation3]   ;;  %s56_s0 = inlined_call_operand.<no memory space> [shape: s32[1], index: 0, kind: input, shape index: {}]   ;;  %s57_s1 = inlined_call_operand.hbm [shape: s32[1], index: 1, kind: output, shape index: {}]  }
   0x1   :  { %p11_p0 = scmp.ne.s32.totalorder %s56_s0, 0 }
   0x3   :  { %s12_s8 = scalar_select %p11_p0, 1, 0 }
   0x5   :  { %14 = sst [smem:[#allocation3]] %s12_s8 }
   0x6   :  { %22 = dma.smem_to_hbm %s39_s9, 16, %s57_s1, [#allocation4]  }
   0x7   :  { %37 = dma.done.wait [#allocation4], 16  }
   0x8   :  { %38 = vsyncadd [#allocation4], 4294967280 }
   0x9   :  { %26 = sfence }
   0xa   :  { %27 = vsyncpa [#allocation4], 1 }

</bundles_post_ra>
